<compile_context>
chip_gen: v5e
topology: v5e:2x2
jax: 0.10.0
libtpu: 0.0.40
codegen_flags: <defaults>
</compile_context>

<pallas_src>
import math

import jax
import jax.numpy as jnp
from jax.experimental import pallas as pl
from jax.experimental.pallas import tpu as pltpu


# ---------------------------------------------------------------------------
# Kernels
# ---------------------------------------------------------------------------

def _onehot_matmul_kernel(idx_ref, w_ref, b_ref, o_ref):
    """Small-vocab path:  o_tile = W @ one_hot(idx_tile).T + b[:, None].

    idx_ref: (1, TB) int32   lane-major token-index tile
    w_ref:   (D, V)          torch Linear layout, whole-array VMEM resident
    b_ref:   (D, 1) float32  VMEM-resident bias column
    o_ref:   (D, TB)         transposed output tile (lane-dense in tokens)
    """
    idx = idx_ref[...]                                          # (1, TB)
    v = w_ref.shape[1]
    tb = idx.shape[1]

    # one_hot(e).T built in-register; out-of-range ids give an all-zero column
    # (matches jax.nn.one_hot -> output is just the bias for those tokens).
    iota_v = jax.lax.broadcasted_iota(jnp.int32, (v, tb), 0)    # (V, TB)
    onehot_t = (iota_v == idx).astype(w_ref.dtype)              # (V, TB)

    out = jnp.dot(w_ref[...], onehot_t,
                  preferred_element_type=jnp.float32)           # (D, TB)
    o_ref[...] = (out + b_ref[...]).astype(o_ref.dtype)


def _gather_kernel(idx_ref, table_ref, b_ref, o_ref):
    """Large-vocab path: per-token row gather from a VMEM-resident table.

    idx_ref:   (n_tokens,) int32 in SMEM (scalar-prefetched)
    table_ref: (V, D)  whole-array VMEM resident (single copy)
    b_ref:     (1, D)  float32 VMEM resident
    o_ref:     (TB, D) output tile
    """
    tb = o_ref.shape[0]
    v = table_ref.shape[0]
    n_total = idx_ref.shape[0]
    base = pl.program_id(0) * tb
    bias = b_ref[...].astype(jnp.float32)                       # (1, D)

    def body(t, carry):
        # Clamp the token position so the ragged final tile never reads SMEM
        # out of bounds; the duplicated rows it produces are dropped by the
        # masked output writeback.
        tok = jnp.minimum(base + t, n_total - 1)
        e = idx_ref[tok]
        in_range = jnp.logical_and(e >= 0, e < v)
        safe = jnp.clip(e, 0, v - 1)
        row = table_ref[pl.ds(safe, 1), :].astype(jnp.float32)  # (1, D)
        row = jnp.where(in_range, row, 0.0)    # one_hot semantics for bad ids
        o_ref[pl.ds(t, 1), :] = (row + bias).astype(o_ref.dtype)
        return carry

    jax.lax.fori_loop(0, tb, body, 0)


# ---------------------------------------------------------------------------
# Wrapper
# ---------------------------------------------------------------------------

def _vmem_limit_bytes(footprint_bytes: int) -> int:
    # 1.5x headroom, floor at 32 MiB (above v5e's 16 MiB default scoped
    # limit), capped at v7x's 64 MiB physical VMEM.
    mib = 1024 * 1024
    return int(min(max(int(1.5 * footprint_bytes), 32 * mib), 64 * mib))


class PallasEmbedding:
    """One-hot + Linear embedding matching the torch `Embedding` module."""

    TOKEN_TILE = 256            # multiple of 256: fills v6e/v7x MXU, lane-dense stores,
                                # >=2 grid steps on realistic batches (v7x megacore)
    ONEHOT_MAX_VOCAB = 1024     # crossover to the gather path (conservative for v5e)
    ONEHOT_MAX_TABLE_BYTES = 4 * 1024 * 1024

    def __init__(self, weight, bias, *, param_dtype=jnp.float32):
        # weight: (embedding_dim, num_embeddings)  torch.nn.Linear layout
        # bias:   (embedding_dim,)
        # param_dtype=jnp.bfloat16 halves the table footprint and speeds up the
        # MXU path (the one-hot is exact in bf16; only weight precision changes).
        emb_dim, num_emb = weight.shape
        self.embedding_dim = int(emb_dim)
        self.num_embeddings = int(num_emb)
        self.param_dtype = jnp.dtype(param_dtype)

        table_bytes = num_emb * emb_dim * self.param_dtype.itemsize
        self.use_onehot = (num_emb <= self.ONEHOT_MAX_VOCAB
                           and table_bytes <= self.ONEHOT_MAX_TABLE_BYTES)

        bias_f32 = bias.astype(jnp.float32)
        if self.use_onehot:
            # Native (D, V) layout used directly -> no transpose anywhere.
            self.w_dv = weight.astype(self.param_dtype)
            self.b_col = bias_f32.reshape(emb_dim, 1)
        else:
            # (V, D) gather table built ONCE here, not per forward call.
            self.table_vd = jnp.transpose(weight).astype(self.param_dtype)
            self.b_row = bias_f32.reshape(1, emb_dim)
            # TODO(synk): if the table exceeds ~32-48 MiB it no longer fits
            # VMEM-resident; switch to an HBM table (memory_space=pl.ANY) with
            # a manually double-buffered DMA row gather.

    def __call__(self, e):
        orig_shape = e.shape
        n = int(math.prod(orig_shape)) if orig_shape else 1
        idx = e.reshape(n).astype(jnp.int32)
        if self.use_onehot:
            out = self._onehot_forward(idx, n).T          # (n, D)
        else:
            out = self._gather_forward(idx, n)            # (n, D)
        return out.reshape(*orig_shape, self.embedding_dim)

    # -- small-vocab MXU path ------------------------------------------------
    def _onehot_forward(self, idx, n):
        d, v = self.embedding_dim, self.num_embeddings
        tb = n if n <= self.TOKEN_TILE else self.TOKEN_TILE
        grid = (pl.cdiv(n, tb),)

        tbp = max(tb, 128)
        footprint = (d * v * self.param_dtype.itemsize    # resident W (single copy)
                     + d * 128 * 4                        # resident bias column
                     + 2 * 8 * tbp * 4                    # 2x index blocks
                     + 2 * d * tbp * 4                    # 2x output blocks
                     + 3 * v * tbp * 4)                   # iota / one-hot temporaries

        return pl.pallas_call(
            _onehot_matmul_kernel,
            out_shape=jax.ShapeDtypeStruct((d, n), jnp.float32),
            grid_spec=pltpu.PrefetchScalarGridSpec(
                num_scalar_prefetch=0,
                grid=grid,
                in_specs=[
                    # lane-major index tile
                    pl.BlockSpec((1, tb), lambda i: (0, i)),
                    # W and bias: whole-array VMEM residents (single copy,
                    # no per-step DMA, no double buffering of constant blocks).
                    pl.BlockSpec(memory_space=pltpu.MemorySpace.VMEM),
                    pl.BlockSpec(memory_space=pltpu.MemorySpace.VMEM),
                ],
                out_specs=pl.BlockSpec((d, tb), lambda i: (0, i)),
            ),
            compiler_params=pltpu.CompilerParams(
                dimension_semantics=("parallel",),
                vmem_limit_bytes=_vmem_limit_bytes(footprint)),
        )(idx.reshape(1, n), self.w_dv, self.b_col)

    # -- large-vocab gather path ----------------------------------------------
    def _gather_forward(self, idx, n):
        d, v = self.embedding_dim, self.num_embeddings
        tb = n if n <= self.TOKEN_TILE else self.TOKEN_TILE
        grid = (pl.cdiv(n, tb),)

        dp = max(d, 128)
        footprint = (v * dp * self.param_dtype.itemsize   # resident table (single copy)
                     + 8 * dp * 4                         # bias row
                     + 2 * max(tb, 8) * dp * 4)           # 2x output blocks

        return pl.pallas_call(
            _gather_kernel,
            out_shape=jax.ShapeDtypeStruct((n, d), jnp.float32),
            grid_spec=pltpu.PrefetchScalarGridSpec(
                num_scalar_prefetch=1,                    # indices -> SMEM
                grid=grid,
                in_specs=[
                    pl.BlockSpec(memory_space=pltpu.MemorySpace.VMEM),  # table
                    pl.BlockSpec(memory_space=pltpu.MemorySpace.VMEM),  # bias
                ],
                out_specs=pl.BlockSpec((tb, d), lambda i, idx_ref: (i, 0)),
            ),
            compiler_params=pltpu.CompilerParams(
                dimension_semantics=("parallel",),
                vmem_limit_bytes=_vmem_limit_bytes(footprint)),
        )(idx, self.table_vd, self.b_row)


# ---------------------------------------------------------------------------
# Self-test
# ---------------------------------------------------------------------------

if __name__ == "__main__":
    key = jax.random.PRNGKey(0)
    k_e1, k_w1, k_b1, k_e2, k_w2, k_b2 = jax.random.split(key, 6)
    B, S = 2, 8

    # ---- Path 1: small vocab -> one-hot MXU path (V=32, D=32) --------------
    V1, D1 = 32, 32
    e1 = jax.random.randint(k_e1, (B, S), 0, V1, dtype=jnp.int32)
    lim1 = 1.0 / math.sqrt(V1)
    w1 = jax.random.uniform(k_w1, (D1, V1), jnp.float32, -lim1, lim1)
    b1 = jax.random.uniform(k_b1, (D1,), jnp.float32, -lim1, lim1)

    emb1 = PallasEmbedding(w1, b1)
    y1 = jax.block_until_ready(emb1(e1))
    ref1 = jax.nn.one_hot(e1, V1, dtype=jnp.float32) @ w1.T + b1
    assert y1.shape == (B, S, D1) and y1.dtype == jnp.float32
    assert jnp.allclose(y1, ref1, atol=1e-5, rtol=1e-5), "one-hot path mismatch"

    # ---- Path 2: larger vocab -> VMEM-resident row-gather path -------------
    V2, D2 = 2048, 128
    e2 = jax.random.randint(k_e2, (B, S), 0, V2, dtype=jnp.int32)
    lim2 = 1.0 / math.sqrt(V2)
    w2 = jax.random.uniform(k_w2, (D2, V2), jnp.float32, -lim2, lim2)
    b2 = jax.random.uniform(k_b2, (D2,), jnp.float32, -lim2, lim2)

    emb2 = PallasEmbedding(w2, b2)
    y2 = jax.block_until_ready(emb2(e2))
    ref2 = w2.T[e2] + b2          # == one_hot(e2, V2) @ w2.T + b2
    assert y2.shape == (B, S, D2) and y2.dtype == jnp.float32
    assert jnp.allclose(y2, ref2, atol=1e-5, rtol=1e-5), "gather path mismatch"

    print("KERNEL_OK")
</pallas_src>

<mosaic_0001>
module attributes {stable_mosaic.version = 11 : i64} {
  func.func @_onehot_matmul_kernel(%arg0: i32, %arg1: memref<1x16xi32, #tpu.memory_space<vmem>>, %arg2: memref<32x32xf32, #tpu.memory_space<vmem>>, %arg3: memref<32x1xf32, #tpu.memory_space<vmem>>, %arg4: memref<32x16xf32, #tpu.memory_space<vmem>>) attributes {dimension_semantics = [#tpu.dimension_semantics<parallel>], iteration_bounds = array<i64: 1>, scalar_prefetch = 0 : i64, scratch_operands = 0 : i64, tpu.core_type = #tpu.core_type<tc>, window_params = [{transform_indices = @transform_0, window_bounds = array<i64: 1, 16>}, {pipeline_mode = #tpu.pipeline_mode<synchronous>, transform_indices = @transform_1, window_bounds = array<i64: 32, 32>}, {pipeline_mode = #tpu.pipeline_mode<synchronous>, transform_indices = @transform_2, window_bounds = array<i64: 32, 1>}, {transform_indices = @transform_3, window_bounds = array<i64: 32, 16>}]} {
    %c0 = arith.constant 0 : index
    %c0_0 = arith.constant 0 : index
    %0 = vector.load %arg1[%c0, %c0_0] : memref<1x16xi32, #tpu.memory_space<vmem>>, vector<1x16xi32>
    %1 = tpu.iota {dimensions = array<i32: 0>} : vector<32x16xi32>
    %2 = vector.broadcast %0 : vector<1x16xi32> to vector<32x16xi32>
    %3 = arith.cmpi eq, %1, %2 : vector<32x16xi32>
    %4 = arith.extui %3 : vector<32x16xi1> to vector<32x16xi32>
    %5 = arith.sitofp %4 : vector<32x16xi32> to vector<32x16xf32>
    %c0_1 = arith.constant 0 : index
    %c0_2 = arith.constant 0 : index
    %6 = vector.load %arg2[%c0_1, %c0_2] : memref<32x32xf32, #tpu.memory_space<vmem>>, vector<32x32xf32>
    %cst = arith.constant dense<0.000000e+00> : vector<32x16xf32>
    %7 = tpu.matmul %6, %5, %cst {dimension_numbers = #tpu.dot_dimension_numbers<[1], [0], [0], [1], [0, 0, 1, 1], [], []>} : vector<32x32xf32>, vector<32x16xf32>, vector<32x16xf32> -> vector<32x16xf32>
    %c0_3 = arith.constant 0 : index
    %c0_4 = arith.constant 0 : index
    %8 = vector.load %arg3[%c0_3, %c0_4] : memref<32x1xf32, #tpu.memory_space<vmem>>, vector<32x1xf32>
    %9 = vector.broadcast %8 : vector<32x1xf32> to vector<32x16xf32>
    %10 = arith.addf %7, %9 : vector<32x16xf32>
    %c0_5 = arith.constant 0 : index
    %c0_6 = arith.constant 0 : index
    %11 = vector.load %arg4[%c0_5, %c0_6] : memref<32x16xf32, #tpu.memory_space<vmem>>, vector<32x16xf32>
    tpu.vector_store %arg4[%c0_5, %c0_6], %10 {strides = array<i32>} : memref<32x16xf32, #tpu.memory_space<vmem>>, vector<32x16xf32>,
    return
  }
  func.func @transform_0(%arg0: i32) -> (i32, i32) {
    %c0_i32 = arith.constant 0 : i32
    %c0_i32_0 = arith.constant 0 : i32
    return %c0_i32, %arg0 : i32, i32
  }
  func.func @transform_1(%arg0: i32) -> (i32, i32) {
    %c0_i32 = arith.constant 0 : i32
    %c0_i32_0 = arith.constant 0 : i32
    %c0_i32_1 = arith.constant 0 : i32
    return %c0_i32, %c0_i32_0 : i32, i32
  }
  func.func @transform_2(%arg0: i32) -> (i32, i32) {
    %c0_i32 = arith.constant 0 : i32
    %c0_i32_0 = arith.constant 0 : i32
    %c0_i32_1 = arith.constant 0 : i32
    return %c0_i32, %c0_i32_0 : i32, i32
  }
  func.func @transform_3(%arg0: i32) -> (i32, i32) {
    %c0_i32 = arith.constant 0 : i32
    %c0_i32_0 = arith.constant 0 : i32
    return %c0_i32, %arg0 : i32, i32
  }
}

</mosaic_0001>

<bundles_post_ra>
// kernel: tpu_custom_call.1
= control target key start
LH: loop header
LB: loop body
LE: loop exit
PB: predicated region body
PF: predicated region fallthrough
CT: control target
= control target key end

     0   :  { %v15_v0 = vlaneseq  ;;  %v141_v1 = vmov 0   ;;  %v142_v9 = vmov 1.0   ;;  %vm61_vm4 = vcmask 261120   ;;  %s202_s0 = inlined_call_operand.vmem [shape: s32[1,16], index: 0, kind: input, shape index: {}]   ;;  %s203_s2 = inlined_call_operand.vmem [shape: f32[32,1], index: 2, kind: input, shape index: {}]   ;;  %s204_s1 = inlined_call_operand.vmem [shape: f32[32,32], index: 1, kind: input, shape index: {}]   ;;  %s205_s3 = inlined_call_operand.vmem [shape: f32[32,16], index: 3, kind: output, shape index: {}]  }
   0x1   :  { %139 = vset.pattern.permute.xlu1 %v141_v1  ;;  %138 = vset.pattern.permute.xlu0 %v141_v1  ;;  %v140_v3 = vld [vmem:[%s202_s0] ss:$0 sm:$0xff]  ;;  %v39_v4 = vld [vmem:[%s203_s2 + $0x10] sm:$0xff]  ;;  %v34_v11 = vld [vmem:[%s204_s1 + $0x8] sm:$0xff]  ;;  %vm103_vm5 = vcmask 130048  }
   0x2   :  { %v16_v2 = vshrl.u32 %v15_v0, 7  ;;  %v37_v5 = vld [vmem:[%s203_s2] sm:$0xff]  ;;  %53 = vperm.xlu1 %139, %v39_v4   ;;  %v35_v12 = vld [vmem:[%s204_s1 + $0x10] sm:$0xff]  ;;  %v36_v13 = vld [vmem:[%s204_s1 + $0x18] sm:$0xff] }
   0x3   :  { %43 = vperm.xlu0 %138, %v37_v5   ;;  %v33_v10 = vld [vmem:[%s204_s1] sm:$0xff]  ;;  %v40_v14 = vld [vmem:[%s203_s2 + $0x18] sm:$0xff]  ;;  %v38_v15 = vld [vmem:[%s203_s2 + $0x8] sm:$0xff] }
   0x4   :  { %v19_v6 = vadd.s32 24, %v16_v2  ;;  %v18_v7 = vadd.s32 16, %v16_v2  ;;  %v17_v8 = vadd.s32 8, %v16_v2  ;;  %vm21_vm3 = vcmp.eq.s32.totalorder %v16_v2, %v140_v3 }
   0x6   :  { %vm24_vm0 = vcmp.eq.s32.totalorder %v19_v6, %v140_v3  ;;  %vm23_vm1 = vcmp.eq.s32.totalorder %v18_v7, %v140_v3  ;;  %vm22_vm2 = vcmp.eq.s32.totalorder %v17_v8, %v140_v3 }
   0x7   :  { %116 = vmatpush.msk.msra.mxu0 %vm24_vm0, %v142_v9  ;;  %124 = vmatpush.msk.msra.mxu1 %vm24_vm0, %v142_v9 }
   0x8   :  { %125 = vmatpush.msk.msra.mxu2 %vm24_vm0, %v142_v9  ;;  %126 = vmatpush.msk.msra.mxu3 %vm24_vm0, %v142_v9 }
   0x9   :  { %117 = vmatpush.msk.msra.mxu0 %vm23_vm1, %v142_v9  ;;  %127 = vmatpush.msk.msra.mxu1 %vm23_vm1, %v142_v9 }
   0xa   :  { %128 = vmatpush.msk.msra.mxu2 %vm23_vm1, %v142_v9  ;;  %129 = vmatpush.msk.msra.mxu3 %vm23_vm1, %v142_v9 }
   0xb   :  { %118 = vmatpush.msk.msra.mxu0 %vm22_vm2, %v142_v9  ;;  %130 = vmatpush.msk.msra.mxu1 %vm22_vm2, %v142_v9 }
   0xc   :  { %131 = vmatpush.msk.msra.mxu2 %vm22_vm2, %v142_v9  ;;  %132 = vmatpush.msk.msra.mxu3 %vm22_vm2, %v142_v9 }
   0xd   :  { %119 = vmatpush.msk.msra.mxu0 %vm21_vm3, %v142_v9  ;;  %133 = vmatpush.msk.msra.mxu1 %vm21_vm3, %v142_v9 }
   0xe   :  { %134 = vmatpush.msk.msra.mxu2 %vm21_vm3, %v142_v9  ;;  %135 = vmatpush.msk.msra.mxu3 %vm21_vm3, %v142_v9 }
   0xf   :  { %120 = vmatmul.msk.f32.vlgmr.msra.gmra.mxu0 %vm61_vm4, %v33_v10  ;;  %121 = vmatmul.msk.f32.vlgmr.msra.gmra.mxu1 %vm61_vm4, %v34_v11 }
  0x10   :  { %122 = vmatmul.msk.f32.vlgmr.msra.gmra.mxu2 %vm61_vm4, %v35_v12  ;;  %123 = vmatmul.msk.f32.vlgmr.msra.gmra.mxu3 %vm61_vm4, %v36_v13 }
  0x11   :  { %58 = vperm.xlu1 %139, %v40_v14   ;;  %48 = vperm.xlu0 %138, %v38_v15  }
  0x74   :  { %v54_v17 = vpop.permute.xlu1 %53 }
  0x75   :  { %v44_v16 = vpop.permute.xlu0 %43 }
  0x83   :  { %v49_v18 = vpop.permute.xlu0 %48  ;;  %v59_v23 = vpop.permute.xlu1 %58 }
  0x8c   :  { %v91_v19 = vpop.f32.mrf.mxu0  ;;  %v94_v20 = vpop.f32.mrf.mxu1 }
  0x8d   :  { %v92_v21 = vadd.f32 %v91_v19, %v44_v16  ;;  %v95_v22 = vadd.f32 %v94_v20, %v49_v18 }
  0x8f   :  { %104 = vst.msk [vmem:[%s205_s3] sm:$0xff] %vm103_vm5, %v92_v21 }
  0x90   :  { %105 = vst.msk [vmem:[%s205_s3 + $0x8] sm:$0xff] %vm103_vm5, %v95_v22 }
  0x93   :  { %v97_v24 = vpop.f32.mrf.mxu2  ;;  %v100_v25 = vpop.f32.mrf.mxu3 }
  0x94   :  { %v98_v26 = vadd.f32 %v97_v24, %v54_v17  ;;  %v101_v27 = vadd.f32 %v100_v25, %v59_v23 }
  0x96   :  { %106 = vst.msk [vmem:[%s205_s3 + $0x10] sm:$0xff] %vm103_vm5, %v98_v26 }
  0x97   :  { %107 = vst.msk [vmem:[%s205_s3 + $0x18] sm:$0xff] %vm103_vm5, %v101_v27 }

</bundles_post_ra>
